<compile_context>
chip_gen: v5e
topology: v5e:2x2
jax: 0.10.0
libtpu: 0.0.40
codegen_flags: <defaults>
</compile_context>

<pallas_src>
import jax
import jax.numpy as jnp
import numpy as np
from jax.experimental import pallas as pl
from jax.experimental.pallas import tpu as pltpu


def _downsample_kernel(xe_ref, xo_ref, w_ref, b_ref, o_ref):
    """One (batch, output-row-tile) grid step of the stride-2 3x3 conv.

    xe_ref: (TH+1, Wout, 3C)  even padded rows 2*ho0 .. 2*(ho0+TH), kw-column-stacked
    xo_ref: (TH,   Wout, 3C)  odd  padded rows 2*ho0+1 .. 2*(ho0+TH)-1
    w_ref : (3, 3C, Cp)       weights, w_ref[kh][kw*C + ci, co]   (Cp = Cout padded to 128)
    b_ref : (1, Cp)           bias (f32, zero in padded lanes)
    o_ref : (TH, Wout, Cp)    output tile (NHWC, padded channels)
    """
    TH, Wout, Cp = o_ref.shape
    C3 = w_ref.shape[1]
    M = TH * Wout

    # kh = 0 / 2 taps are contiguous leading-dim windows of the even-row block;
    # kh = 1 is the whole odd-row block.  No strided selection, no concat.
    s0 = xe_ref[pl.ds(0, TH)].reshape(M, C3)   # padded rows 2*ho      (kh = 0)
    s2 = xe_ref[pl.ds(1, TH)].reshape(M, C3)   # padded rows 2*ho + 2  (kh = 2)
    s1 = xo_ref[...].reshape(M, C3)            # padded rows 2*ho + 1  (kh = 1)

    # Native-dtype MXU feed, f32 accumulation; kw taps already folded into K = 3C.
    acc = jnp.dot(s0, w_ref[0], preferred_element_type=jnp.float32)
    acc = acc + jnp.dot(s1, w_ref[1], preferred_element_type=jnp.float32)
    acc = acc + jnp.dot(s2, w_ref[2], preferred_element_type=jnp.float32)

    # Bias fused into the store epilogue (no broadcast-seeded accumulator).
    acc = acc + b_ref[...].astype(jnp.float32)
    o_ref[...] = acc.reshape(TH, Wout, Cp).astype(o_ref.dtype)


def _vmem_capacity_bytes():
    try:
        return int(pltpu.get_tpu_info().vmem_capacity_bytes)
    except Exception:
        return 128 << 20  # v5e / v6e physical VMEM


def _pick_tile_rows(hout, wout, c3, itemsize, budget_bytes):
    """Largest TH whose per-step input slab ((TH+1) even + TH odd rows of (Wout,3C)) fits."""
    row_bytes = max(1, wout * c3 * itemsize)
    return int(max(1, min(hout, (budget_bytes // row_bytes - 1) // 2)))


def downsample(x_nchw, weight_oihw, bias, *, tile_rows=None):
    """PyTorch Conv2d(C, C, kernel_size=3, stride=2, padding=1) forward.

    x_nchw: (B, C, H, W); weight_oihw: (C, C, 3, 3); bias: (C,).
    Returns (B, C, Hout, Wout).
    """
    B, C, H, W = x_nchw.shape
    Hout = (H - 1) // 2 + 1      # (H + 2 - 3)//2 + 1
    Wout = (W - 1) // 2 + 1
    C3 = 3 * C
    Cp = ((C + 127) // 128) * 128            # lane-dense matmul N dim / output stores

    dtype = x_nchw.dtype
    itemsize = jnp.dtype(dtype).itemsize

    # Generation-aware budgets: v7x has only 64 MiB physical VMEM per TC.
    vmem_cap = _vmem_capacity_bytes()
    budget = (4 << 20) if vmem_cap <= (64 << 20) else (6 << 20)

    TH = tile_rows if tile_rows is not None else _pick_tile_rows(Hout, Wout, C3, itemsize, budget)
    TH = max(1, min(int(TH), Hout))
    if tile_rows is None and Hout >= 2:
        TH = min(TH, pl.cdiv(Hout, 2))       # keep >= 2 row tiles (v7x 2-TC balance at B=1)
    nh = pl.cdiv(Hout, TH)
    TH = pl.cdiv(Hout, nh)                   # rebalance tile sizes across the grid
    nh = pl.cdiv(Hout, TH)
    Hgrid = nh * TH                          # output rows covered by the (padded) grid

    # ---- wrapper-side staging (plain JAX; XLA fuses it into a relayout pass) ----
    # NCHW -> NHWC, zero pad, column-stack the 3 kw taps so the kernel never reads a
    # strided W window:  xc[b, r, wo, kw*C + ci] = x_pad[b, r, 2*wo + kw, ci]
    x_nhwc = jnp.transpose(x_nchw, (0, 2, 3, 1))
    pad_bottom = max(0, 2 * Hgrid + 1 - (H + 1))
    x_pad = jnp.pad(x_nhwc, ((0, 0), (1, pad_bottom), (1, 1), (0, 0)))
    cols = [x_pad[:, :, kw:kw + 2 * Wout:2, :] for kw in range(3)]
    xc = jnp.stack(cols, axis=3).reshape(B, 2 * Hgrid + 1, Wout, C3)

    # De-interleave padded rows: even rows feed the kh=0 / kh=2 taps, odd rows kh=1.
    xeven = xc[:, 0::2]                      # (B, Hgrid + 1, Wout, 3C)
    xodd = xc[:, 1::2]                       # (B, Hgrid,     Wout, 3C)
    # Pre-tile the even rows with a 1-row halo per tile so every kernel block is a
    # plain contiguous Blocked block (no element-offset / overlapping BlockSpecs).
    row_ids = jnp.arange(nh)[:, None] * TH + jnp.arange(TH + 1)[None, :]
    xeven_t = xeven[:, row_ids]              # (B, nh, TH + 1, Wout, 3C)

    # Weights OIHW -> (kh, kw*Cin, Cout); Cout zero-padded to Cp for lane-dense stores.
    w_k = jnp.transpose(weight_oihw, (2, 3, 1, 0)).reshape(3, C3, C).astype(dtype)
    w_k = jnp.pad(w_k, ((0, 0), (0, 0), (0, Cp - C)))
    b2d = jnp.pad(bias.astype(jnp.float32), (0, Cp - C)).reshape(1, Cp)

    # VMEM limit from the actual double-buffered working set (+ headroom), capped for v7x.
    in_blk = ((TH + 1) + TH) * Wout * C3 * itemsize
    out_blk = TH * Wout * Cp * itemsize
    acc_blk = TH * Wout * Cp * 4
    w_bytes = 3 * C3 * Cp * itemsize + Cp * 4
    need = 2 * (in_blk + out_blk) + 2 * w_bytes + 2 * acc_blk + (4 << 20)
    vmem_limit = int(min(max(need, 16 << 20), min(48 << 20, (vmem_cap * 3) // 4)))

    grid_spec = pltpu.PrefetchScalarGridSpec(
        num_scalar_prefetch=0,
        grid=(B, nh),
        in_specs=[
            # Even-row tile (with its 1-row halo): (TH+1, Wout, 3C) per grid step.
            pl.BlockSpec((None, None, TH + 1, Wout, C3), lambda b, h: (b, h, 0, 0, 0)),
            # Odd-row tile: (TH, Wout, 3C).
            pl.BlockSpec((None, TH, Wout, C3), lambda b, h: (b, h, 0, 0)),
            # Weights / bias: grid-constant, stay resident in VMEM.
            pl.BlockSpec((3, C3, Cp), lambda b, h: (0, 0, 0)),
            pl.BlockSpec((1, Cp), lambda b, h: (0, 0)),
        ],
        out_specs=pl.BlockSpec((None, TH, Wout, Cp), lambda b, h: (b, h, 0, 0)),
    )

    out = pl.pallas_call(
        _downsample_kernel,
        out_shape=jax.ShapeDtypeStruct((B, Hgrid, Wout, Cp), dtype),
        grid_spec=grid_spec,
        compiler_params=pltpu.CompilerParams(
            # No cross-step accumulation -> both axes parallel (v7x 2-TC sharding).
            dimension_semantics=("parallel", "parallel"),
            vmem_limit_bytes=vmem_limit,
        ),
    )(xeven_t, xodd, w_k, b2d)

    out = out[:, :Hout, :, :C]               # drop padded rows / padded channels
    return jnp.transpose(out, (0, 3, 1, 2))  # back to NCHW


def _reference(x, weight, bias):
    return jax.lax.conv_general_dilated(
        x, weight, window_strides=(2, 2), padding=((1, 1), (1, 1)),
        dimension_numbers=("NCHW", "OIHW", "NCHW"),
    ) + bias[None, :, None, None]


if __name__ == "__main__":
    key = jax.random.PRNGKey(0)

    def make_case(k, B, C, H, W):
        kx, kw, kb = jax.random.split(k, 3)
        bound = 1.0 / np.sqrt(C * 3 * 3)
        x = jax.random.normal(kx, (B, C, H, W), dtype=jnp.float32)
        weight = jax.random.uniform(kw, (C, C, 3, 3), dtype=jnp.float32,
                                    minval=-bound, maxval=bound)
        b = jax.random.uniform(kb, (C,), dtype=jnp.float32,
                               minval=-bound, maxval=bound)
        return x, weight, b

    down = jax.jit(downsample)

    # Primary small-shape case (module smoke-test sizing).
    x, weight, bias = make_case(key, 2, 4, 16, 16)
    out = jax.block_until_ready(down(x, weight, bias))
    assert out.shape == (2, 4, 8, 8), out.shape
    np.testing.assert_allclose(np.asarray(out), np.asarray(_reference(x, weight, bias)),
                               rtol=1e-5, atol=1e-5)

    # Odd output size exercises the cdiv row tiling + padded last tile.
    x1, weight1, bias1 = make_case(jax.random.fold_in(key, 1), 1, 4, 18, 18)
    out1 = jax.block_until_ready(down(x1, weight1, bias1))
    assert out1.shape == (1, 4, 9, 9), out1.shape
    np.testing.assert_allclose(np.asarray(out1), np.asarray(_reference(x1, weight1, bias1)),
                               rtol=1e-4, atol=1e-4)

    # Production-ish channel count (lane-dense path).  Looser tolerance: the MXU's
    # default-precision f32 matmul and XLA's conv round differently at K = 3C.
    x2, weight2, bias2 = make_case(jax.random.fold_in(key, 2), 2, 128, 16, 16)
    out2 = jax.block_until_ready(down(x2, weight2, bias2))
    assert out2.shape == (2, 128, 8, 8), out2.shape
    np.testing.assert_allclose(np.asarray(out2), np.asarray(_reference(x2, weight2, bias2)),
                               rtol=2e-2, atol=2e-2)

    print("KERNEL_OK")
</pallas_src>

<mosaic_0001>
module attributes {stable_mosaic.version = 11 : i64} {
  func.func @_downsample_kernel(%arg0: i32, %arg1: i32, %arg2: memref<1x1x5x8x12xf32, #tpu.memory_space<vmem>>, %arg3: memref<1x4x8x12xf32, #tpu.memory_space<vmem>>, %arg4: memref<3x12x128xf32, #tpu.memory_space<vmem>>, %arg5: memref<1x128xf32, #tpu.memory_space<vmem>>, %arg6: memref<1x4x8x128xf32, #tpu.memory_space<vmem>>) attributes {dimension_semantics = [#tpu.dimension_semantics<parallel>, #tpu.dimension_semantics<parallel>], iteration_bounds = array<i64: 2, 2>, scalar_prefetch = 0 : i64, scratch_operands = 0 : i64, tpu.core_type = #tpu.core_type<tc>, window_params = [{transform_indices = @transform_0, window_bounds = array<i64: 1, 1, 5, 8, 12>}, {transform_indices = @transform_1, window_bounds = array<i64: 1, 4, 8, 12>}, {pipeline_mode = #tpu.pipeline_mode<synchronous>, transform_indices = @transform_2, window_bounds = array<i64: 3, 12, 128>}, {pipeline_mode = #tpu.pipeline_mode<synchronous>, transform_indices = @transform_3, window_bounds = array<i64: 1, 128>}, {transform_indices = @transform_4, window_bounds = array<i64: 1, 4, 8, 128>}]} {
    %c0 = arith.constant 0 : index
    %c0_0 = arith.constant 0 : index
    %c0_1 = arith.constant 0 : index
    %c0_2 = arith.constant 0 : index
    %c0_3 = arith.constant 0 : index
    %0 = vector.load %arg2[%c0, %c0_0, %c0_1, %c0_2, %c0_3] : memref<1x1x5x8x12xf32, #tpu.memory_space<vmem>>, vector<1x1x4x8x12xf32>
    %1 = vector.shape_cast %0 : vector<1x1x4x8x12xf32> to vector<4x8x12xf32>
    %2 = vector.shape_cast %1 : vector<4x8x12xf32> to vector<32x12xf32>
    %c0_4 = arith.constant 0 : index
    %c0_5 = arith.constant 0 : index
    %c1 = arith.constant 1 : index
    %c0_6 = arith.constant 0 : index
    %c0_7 = arith.constant 0 : index
    %3 = vector.load %arg2[%c0_4, %c0_5, %c1, %c0_6, %c0_7] : memref<1x1x5x8x12xf32, #tpu.memory_space<vmem>>, vector<1x1x4x8x12xf32>
    %4 = vector.shape_cast %3 : vector<1x1x4x8x12xf32> to vector<4x8x12xf32>
    %5 = vector.shape_cast %4 : vector<4x8x12xf32> to vector<32x12xf32>
    %c0_8 = arith.constant 0 : index
    %c0_9 = arith.constant 0 : index
    %c0_10 = arith.constant 0 : index
    %c0_11 = arith.constant 0 : index
    %6 = vector.load %arg3[%c0_8, %c0_9, %c0_10, %c0_11] : memref<1x4x8x12xf32, #tpu.memory_space<vmem>>, vector<1x4x8x12xf32>
    %7 = vector.shape_cast %6 : vector<1x4x8x12xf32> to vector<4x8x12xf32>
    %8 = vector.shape_cast %7 : vector<4x8x12xf32> to vector<32x12xf32>
    %c0_12 = arith.constant 0 : index
    %c0_13 = arith.constant 0 : index
    %c0_14 = arith.constant 0 : index
    %9 = vector.load %arg4[%c0_12, %c0_13, %c0_14] : memref<3x12x128xf32, #tpu.memory_space<vmem>>, vector<1x12x128xf32>
    %10 = vector.shape_cast %9 : vector<1x12x128xf32> to vector<12x128xf32>
    %cst = arith.constant dense<0.000000e+00> : vector<32x128xf32>
    %11 = tpu.matmul %2, %10, %cst {dimension_numbers = #tpu.dot_dimension_numbers<[1], [0], [0], [1], [0, 0, 1, 1], [], []>} : vector<32x12xf32>, vector<12x128xf32>, vector<32x128xf32> -> vector<32x128xf32>
    %c1_15 = arith.constant 1 : index
    %c0_16 = arith.constant 0 : index
    %c0_17 = arith.constant 0 : index
    %12 = vector.load %arg4[%c1_15, %c0_16, %c0_17] : memref<3x12x128xf32, #tpu.memory_space<vmem>>, vector<1x12x128xf32>
    %13 = vector.shape_cast %12 : vector<1x12x128xf32> to vector<12x128xf32>
    %cst_18 = arith.constant dense<0.000000e+00> : vector<32x128xf32>
    %14 = tpu.matmul %8, %13, %cst_18 {dimension_numbers = #tpu.dot_dimension_numbers<[1], [0], [0], [1], [0, 0, 1, 1], [], []>} : vector<32x12xf32>, vector<12x128xf32>, vector<32x128xf32> -> vector<32x128xf32>
    %15 = arith.addf %11, %14 : vector<32x128xf32>
    %c2 = arith.constant 2 : index
    %c0_19 = arith.constant 0 : index
    %c0_20 = arith.constant 0 : index
    %16 = vector.load %arg4[%c2, %c0_19, %c0_20] : memref<3x12x128xf32, #tpu.memory_space<vmem>>, vector<1x12x128xf32>
    %17 = vector.shape_cast %16 : vector<1x12x128xf32> to vector<12x128xf32>
    %cst_21 = arith.constant dense<0.000000e+00> : vector<32x128xf32>
    %18 = tpu.matmul %5, %17, %cst_21 {dimension_numbers = #tpu.dot_dimension_numbers<[1], [0], [0], [1], [0, 0, 1, 1], [], []>} : vector<32x12xf32>, vector<12x128xf32>, vector<32x128xf32> -> vector<32x128xf32>
    %19 = arith.addf %15, %18 : vector<32x128xf32>
    %c0_22 = arith.constant 0 : index
    %c0_23 = arith.constant 0 : index
    %20 = vector.load %arg5[%c0_22, %c0_23] : memref<1x128xf32, #tpu.memory_space<vmem>>, vector<1x128xf32>
    %21 = vector.broadcast %20 : vector<1x128xf32> to vector<32x128xf32>
    %22 = arith.addf %19, %21 : vector<32x128xf32>
    %23 = vector.shape_cast %22 : vector<32x128xf32> to vector<4x8x128xf32>
    %c0_24 = arith.constant 0 : index
    %c0_25 = arith.constant 0 : index
    %c0_26 = arith.constant 0 : index
    %c0_27 = arith.constant 0 : index
    %24 = vector.load %arg6[%c0_24, %c0_25, %c0_26, %c0_27] : memref<1x4x8x128xf32, #tpu.memory_space<vmem>>, vector<1x4x8x128xf32>
    %25 = vector.shape_cast %24 : vector<1x4x8x128xf32> to vector<4x8x128xf32>
    %26 = vector.shape_cast %23 : vector<4x8x128xf32> to vector<1x4x8x128xf32>
    tpu.vector_store %arg6[%c0_24, %c0_25, %c0_26, %c0_27], %26 {strides = array<i32>} : memref<1x4x8x128xf32, #tpu.memory_space<vmem>>, vector<1x4x8x128xf32>,
    return
  }
  func.func @transform_0(%arg0: i32, %arg1: i32) -> (i32, i32, i32, i32, i32) {
    %c0_i32 = arith.constant 0 : i32
    %c0_i32_0 = arith.constant 0 : i32
    %c0_i32_1 = arith.constant 0 : i32
    %c0_i32_2 = arith.constant 0 : i32
    return %arg0, %arg1, %c0_i32, %c0_i32_0, %c0_i32_1 : i32, i32, i32, i32, i32
  }
  func.func @transform_1(%arg0: i32, %arg1: i32) -> (i32, i32, i32, i32) {
    %c0_i32 = arith.constant 0 : i32
    %c0_i32_0 = arith.constant 0 : i32
    %c0_i32_1 = arith.constant 0 : i32
    return %arg0, %arg1, %c0_i32, %c0_i32_0 : i32, i32, i32, i32
  }
  func.func @transform_2(%arg0: i32, %arg1: i32) -> (i32, i32, i32) {
    %c0_i32 = arith.constant 0 : i32
    %c0_i32_0 = arith.constant 0 : i32
    %c0_i32_1 = arith.constant 0 : i32
    %c0_i32_2 = arith.constant 0 : i32
    return %c0_i32, %c0_i32_0, %c0_i32_1 : i32, i32, i32
  }
  func.func @transform_3(%arg0: i32, %arg1: i32) -> (i32, i32) {
    %c0_i32 = arith.constant 0 : i32
    %c0_i32_0 = arith.constant 0 : i32
    %c0_i32_1 = arith.constant 0 : i32
    return %c0_i32, %c0_i32_0 : i32, i32
  }
  func.func @transform_4(%arg0: i32, %arg1: i32) -> (i32, i32, i32, i32) {
    %c0_i32 = arith.constant 0 : i32
    %c0_i32_0 = arith.constant 0 : i32
    %c0_i32_1 = arith.constant 0 : i32
    return %arg0, %arg1, %c0_i32, %c0_i32_0 : i32, i32, i32, i32
  }
}

</mosaic_0001>

<bundles_post_ra>
// kernel: downsample.1
= control target key start
LH: loop header
LB: loop body
LE: loop exit
PB: predicated region body
PF: predicated region fallthrough
CT: control target
= control target key end

     0   :  { %s704_s15 = smov 0   ;;  %s706_s16 = smov 0   ;;  %s813_s0 = inlined_call_operand.vmem [shape: f32[2,2,5,8,12], index: 0, kind: input, shape index: {}]   ;;  %s814_s1 = inlined_call_operand.vmem [shape: f32[2,8,8,12], index: 1, kind: input, shape index: {}]   ;;  %s815_s2 = inlined_call_operand.vmem [shape: f32[3,12,128], index: 2, kind: input, shape index: {}]   ;;  %s816_s3 = inlined_call_operand.vmem [shape: f32[1,128], index: 3, kind: input, shape index: {}]   ;;  %s817_s4 = inlined_call_operand.vmem [shape: f32[2,8,8,128], index: 4, kind: output, shape index: {}]  }
   0x1   :  { %s708_s17 = smov 0   ;;  %s710_s18 = smov 0  }
   0x2   :  { %s712_s19 = smov 0  }
   0x3 LB: > { %s23_s20 = sadd.s32 1, %s669_s17  ;;  %s26_s21 = sadd.s32 1, %s673_s18  ;;  %s677_s19 = sphi %s712_s19, %s14_s19   ;;  %s673_s18 = sphi %s710_s18, %s821_s18   ;;  %s669_s17 = sphi %s708_s17, %s820_s17   ;;  %s665_s16 = sphi %s706_s16, %s819_s16   ;;  %s661_s15 = sphi %s704_s15, %s818_s15  }
   0x4   : > { %p24_p0 = scmp.ge.s32.totalorder %s23_s20, 2  ;;  %p557_p1 = scmp.ge.s32.totalorder %s677_s19, 1 }
   0x5   : > { %p199_p2 = scmp.lt.s32.totalorder %s677_s19, 5 }
   0x6   : > { %s823_s20 = smov (%p24_p0, %s23_s20), 0  ;;  %s825_s21 = smov (!%p24_p0, %s26_s21), %s673_s18 }
   0x7   : > { %p200_p3 = pnand %p557_p1, %p199_p2  ;;  %p28_p4 = scmp.ge.s32.totalorder %s825_s21, 2 }
   0x8   : > { %p242_p5 = scmp.lt.s32.totalorder (!%p200_p3), %s665_s16, 1  ;;  %p244_p6 = scmp.lt.s32.totalorder (!%p200_p3), %s661_s15, 1 }
   0x9   : > { %s827_s21 = smov (%p28_p4, %s825_s21), 0  ;;  %203 = sbr.rel (%p200_p3) target bundleno = 177 (0xb1), region = 36 }
   0xa   : > { %s559_s6 = sshll.u32 (!%p200_p3), %s661_s15, 2 }
   0xb   : > { %p254_p7 = scmp.lt.s32.totalorder (!%p200_p3), %s559_s6, 7 }
   0xe   : > { %v570_v0 = vld [vmem:[%s815_s2 + $0x18] sm:$0xf]  ;;  %vm302_vm0 = vcmask 1043456   ;;  %v569_v1 = vld [vmem:[%s815_s2 + $0x10] sm:$0xff]  ;;  %v582_v2 = vld [vmem:[%s815_s2 + $0x28] sm:$0xf] }
   0xf   : > { %571 = vmatpush.msk.msra.mxu0 %vm302_vm0, %v570_v0  ;;  %590 = vmatpush.msk.msra.mxu3 %vm302_vm0, %v570_v0  ;;  %v581_v3 = vld [vmem:[%s815_s2 + $0x20] sm:$0xff]  ;;  %v285_v4 = vld [vmem:[%s815_s2 + $0x8] sm:$0xf]  ;;  %s829_s16 = smov (!%p242_p5, %s665_s16), 1  ;;  %s831_s15 = smov (!%p244_p6, %s661_s15), 1  ;;  %vm289_vm1 = vcmask 97280  }
  0x10   : > { %594 = vmatpush.msk.msra.mxu2 %vm302_vm0, %v582_v2  ;;  %592 = vmatpush.msk.msra.mxu1 %vm302_vm0, %v285_v4  ;;  %v284_v5 = vld [vmem:[%s815_s2] sm:$0xff]  ;;  %s597_s9 = smul.u32 10, %s829_s16  ;;  %s560_s11 = sshll.u32 %s829_s16, 3 }
  0x11   : > { %321 = vmatpush.msra.mxu0 %v569_v1  ;;  %591 = vmatpush.msra.mxu3 %v569_v1  ;;  %s596_s10 = smul.u32 5, %s831_s15  ;;  %s833_s6 = smov (!%p254_p7, %s559_s6), 7  ;;  %v638_v20 = vld [vmem:[%s816_s3] ss:$0 sm:$0xff] }
  0x12   : > { %595 = vmatpush.msra.mxu2 %v581_v3  ;;  %593 = vmatpush.msra.mxu1 %v284_v5  ;;  %s766_s14 = sadd.s32 %s560_s11, %s833_s6 }
  0x13   : > { %576 = vmatpush.msk.msrb.mxu0 %vm302_vm0, %v285_v4  ;;  %s248_s12 = sadd.s32 %s597_s9, %s596_s10  ;;  %s561_s25 = sshll.u32 %s766_s14, 3 }
  0x14   : > { %s558_s13 = sshll.u32 %s248_s12, 3  ;;  %s259_s15 = scalar_lea.vmem %s814_s1, %s561_s25 }
  0x15   : > { %365 = vmatpush.msrb.mxu0 %v284_v5  ;;  %s250_s24 = scalar_lea.vmem %s813_s0, %s558_s13  ;;  %v280_v8 = vld [vmem:[%s259_s15] sm:$0xff]  ;;  %v281_v9 = vld [vmem:[%s259_s15 + $0x8] sm:$0xff]  ;;  %v282_v11 = vld [vmem:[%s259_s15 + $0x10] sm:$0xff]  ;;  %s269_s5 = scalar_lea.vmem %s817_s4, %s561_s25 }
  0x16   : > { %v566_v6 = vld [vmem:[%s250_s24 + $0x10] sm:$0xff]  ;;  %v272_v7 = vld [vmem:[%s250_s24 + $0x8] sm:$0xff]  ;;  %572 = vmatmul.msk.f32.vlgmr.msra.gmra.mxu0 %vm289_vm1, %v280_v8  ;;  %573 = vmatmul.msk.f32.vlgmr.msra.gmra.mxu3 %vm289_vm1, %v281_v9  ;;  %v567_v10 = vld [vmem:[%s250_s24 + $0x18] sm:$0xff] }
  0x17   : > { %585 = vmatmul.msk.f32.vlgmr.msra.gmra.mxu2 %vm289_vm1, %v566_v6  ;;  %578 = vmatmul.msk.f32.vlgmr.msra.gmra.mxu1 %vm289_vm1, %v272_v7  ;;  %v271_v12 = vld [vmem:[%s250_s24] sm:$0xff]  ;;  %v283_v14 = vld [vmem:[%s259_s15 + $0x18] sm:$0xff] }
  0x18   : > { %583 = vmatpush.msk.msra.mxu0 %vm302_vm0, %v582_v2  ;;  %v568_v13 = vld [vmem:[%s250_s24 + $0x20] sm:$0xff] }
  0x1a   : > { %412 = vmatpush.msra.mxu0 %v581_v3 }
  0x1e   : > { %574 = vmatmul.msk.f32.gmra.mxu3 %vm289_vm1, %v282_v11  ;;  %577 = vmatmul.msk.f32.vlgmr.msrb.gmra.mxu0 %vm289_vm1, %v271_v12 }
  0x1f   : > { %586 = vmatmul.msk.f32.gmra.mxu2 %vm289_vm1, %v567_v10  ;;  %579 = vmatmul.msk.f32.gmra.mxu1 %vm289_vm1, %v566_v6 }
  0x26   : > { %575 = vmatmul.msk.f32.gmra.mxu3 %vm289_vm1, %v283_v14  ;;  %584 = vmatmul.msk.f32.vlgmr.msra.gmra.mxu0 %vm289_vm1, %v272_v7 }
  0x27   : > { %587 = vmatmul.msk.f32.gmra.mxu2 %vm289_vm1, %v568_v13  ;;  %580 = vmatmul.msk.f32.gmra.mxu1 %vm289_vm1, %v567_v10 }
  0x93   : > { %v323_v15 = vpop.f32.mrf.mxu0 }
  0x94   : > { %v370_v16 = vpop.f32.mrf.mxu1 }
  0x99   : > { %v326_v18 = vpop.f32.mrf.mxu3 }
  0x9a   : > { %v417_v17 = vpop.f32.mrf.mxu2  ;;  %v371_v19 = vadd.f32 %v370_v16, %v326_v18 }
  0x9b   : > { %v367_v21 = vpop.f32.mrf.mxu0 }
  0x9c   : > { %v427_v22 = vadd.f32 %v417_v17, %v371_v19  ;;  %v373_v23 = vpop.f32.mrf.mxu1  ;;  %v368_v27 = vadd.f32 %v367_v21, %v323_v15 }
  0x9e   : > { %v435_v24 = vadd.f32 %v638_v20, %v427_v22 }
  0xa0   : > { %439 = vst [vmem:[%s269_s5 + $0x8] sm:$0xff] %v435_v24 }
  0xa1   : > { %v329_v26 = vpop.f32.mrf.mxu3 }
  0xa2   : > { %v420_v25 = vpop.f32.mrf.mxu2  ;;  %v374_v28 = vadd.f32 %v373_v23, %v329_v26 }
  0xa3   : > { %v414_v29 = vpop.f32.mrf.mxu0 }
  0xa4   : > { %v426_v30 = vadd.f32 %v414_v29, %v368_v27  ;;  %v428_v31 = vadd.f32 %v420_v25, %v374_v28  ;;  %v376_v34 = vpop.f32.mrf.mxu1 }
  0xa6   : > { %v434_v32 = vadd.f32 %v638_v20, %v426_v30  ;;  %v436_v33 = vadd.f32 %v638_v20, %v428_v31 }
  0xa8   : > { %438 = vst [vmem:[%s269_s5] sm:$0xff] %v434_v32 }
  0xa9   : > { %440 = vst [vmem:[%s269_s5 + $0x10] sm:$0xff] %v436_v33  ;;  %v332_v35 = vpop.f32.mrf.mxu3 }
  0xaa   : > { %v423_v36 = vpop.f32.mrf.mxu2  ;;  %v377_v37 = vadd.f32 %v376_v34, %v332_v35 }
  0xac   : > { %v429_v38 = vadd.f32 %v423_v36, %v377_v37 }
  0xae   : > { %v437_v39 = vadd.f32 %v638_v20, %v429_v38 }
  0xb0   : > { %441 = vst [vmem:[%s269_s5 + $0x18] sm:$0xff] %v437_v39 }
  0xb1 PF: > { %s14_s19 = sadd.s32 1, %s677_s19   ;;  %s818_s15 = smov %s669_s17 }
  0xb2   : > { %p11_p8 = scmp.ge.s32.totalorder %s14_s19, 6   ;;  %s819_s16 = smov %s673_s18 }
  0xb3   : > { %s820_s17 = smov %s823_s20  ;;  %s821_s18 = smov %s827_s21 }
  0xb4   :  { %13 = sbr.rel (!%p11_p8) target bundleno = 3 (0x3), region = 72 }

</bundles_post_ra>
